<compile_context>
chip_gen: v6e
topology: v6e:2x2x1
jax: 0.10.0
libtpu: 0.0.40
codegen_flags: <defaults>
</compile_context>

<pallas_src>
import jax
import jax.numpy as jnp
import numpy as np
from jax import lax
from jax.experimental import pallas as pl
from jax.experimental.pallas import tpu as pltpu


def attention_kernel(tok_ref, emb_ref, pe_ref, w_ref, bo_ref, out_ref, attn_ref):
    """Single-block attention forward.

    tok_ref : (N*L, 1) int32  tokens in {0,1}, flattened over the batch
    emb_ref : (2, D)   f32    embedding table
    pe_ref  : (N*L, D) f32    positional encoding, pre-tiled over the batch
    w_ref   : (D, 2D+1) f32   fused projection [Wq^T/sqrt(D) | Wk^T | (Wo@Wv)^T]
    bo_ref  : (1, 1)   f32    output bias
    out_ref : (N*L, 1) f32    predicted mapping (flattened)
    attn_ref: (N*L, L) f32    attention matrices (flattened over batch)
    """
    d = emb_ref.shape[1]
    nl, l = attn_ref.shape
    n = nl // l

    # Binary-vocab embedding lookup as an elementwise select
    # (valid because nn.Embedding(2, D) implies tokens in {0, 1}).
    tok = tok_ref[...]                                   # (N*L, 1) int32
    e0 = emb_ref[0:1, :]                                 # (1, D)
    e1 = emb_ref[1:2, :]                                 # (1, D)
    x = jnp.where(tok == 1, e1, e0) + pe_ref[...]        # (N*L, D)

    # One fused projection matmul over the flattened batch:
    #   columns [0 : D)   -> q (already scaled by 1/sqrt(D))
    #   columns [D : 2D)  -> k
    #   column  [2D]      -> v @ Wo^T   ((attn @ v) @ Wo^T == attn @ (v @ Wo^T))
    proj = jnp.dot(x, w_ref[...], preferred_element_type=jnp.float32)  # (N*L, 2D+1)

    bias = bo_ref[...]                                   # (1, 1), broadcast-added

    # Per-batch score/softmax/output. N is tiny and static -> unrolled at trace
    # time with purely static slices; each iteration is one small MXU matmul
    # pair plus VPU/EUP softmax work.
    for b in range(n):
        r0 = b * l
        qb = proj[r0:r0 + l, 0:d]                        # (L, D), scale pre-folded
        kb = proj[r0:r0 + l, d:2 * d]                    # (L, D)
        vob = proj[r0:r0 + l, 2 * d:2 * d + 1]           # (L, 1) == v_b @ Wo^T

        # score = q_b @ k_b^T : contract the last dims (no explicit transpose).
        score = lax.dot_general(qb, kb, (((1,), (1,)), ((), ())),
                                preferred_element_type=jnp.float32)   # (L, L)

        m = jnp.max(score, axis=-1, keepdims=True)
        p = jnp.exp(score - m)
        s = jnp.sum(p, axis=-1, keepdims=True)
        # approx=True would route this to the EUP; kept exact so the f32 parity
        # check against the XLA reference holds tightly.
        attn_b = p * pl.reciprocal(s, approx=False)

        out_b = jnp.dot(attn_b, vob, preferred_element_type=jnp.float32) + bias

        attn_ref[r0:r0 + l, :] = attn_b                  # (L, L)
        out_ref[r0:r0 + l, :] = out_b                    # (L, 1)


def attention_forward(tokens, emb, pe, wq, wk, wv, wo, bo):
    n, L = tokens.shape
    D = emb.shape[1]

    # ---- one-time parameter / input prep (outside the kernel) ----
    scale = 1.0 / jnp.sqrt(jnp.float32(D))
    w_vo = wo @ wv                                        # (1, D) folded V->out row
    w_fused = jnp.concatenate([wq * scale, wk, w_vo], axis=0)   # (2D+1, D)
    w_fused_t = w_fused.T                                 # (D, 2D+1): kernel does x @ W

    tok_flat = tokens.reshape(n * L, 1).astype(jnp.int32)
    pe_tiled = jnp.tile(pe, (n, 1)).astype(jnp.float32)   # (N*L, D)
    bo2 = bo.reshape(1, 1).astype(jnp.float32)

    def full_spec(shape):
        r = len(shape)
        return pl.BlockSpec(shape, lambda i, _r=r: (0,) * _r)

    out_shape = (jax.ShapeDtypeStruct((n * L, 1), jnp.float32),
                 jax.ShapeDtypeStruct((n * L, L), jnp.float32))

    out_col, attn_flat = pl.pallas_call(
        attention_kernel,
        out_shape=out_shape,
        grid=(1,),
        in_specs=[full_spec(tok_flat.shape),
                  full_spec(emb.shape),
                  full_spec(pe_tiled.shape),
                  full_spec(w_fused_t.shape),
                  full_spec(bo2.shape)],
        out_specs=(full_spec((n * L, 1)), full_spec((n * L, L))),
        compiler_params=pltpu.CompilerParams(
            dimension_semantics=("arbitrary",)),
    )(tok_flat, emb, pe_tiled, w_fused_t, bo2)

    return out_col.reshape(n, L), attn_flat.reshape(n, L, L)


def sinusoidal_pe(length, d_model):
    position = jnp.arange(length, dtype=jnp.float32)[:, None]
    div_term = jnp.exp(jnp.arange(0, d_model, 2, dtype=jnp.float32)
                       * (-jnp.log(10000.0) / d_model))
    pe = jnp.zeros((length, d_model), dtype=jnp.float32)
    pe = pe.at[:, 0::2].set(jnp.sin(position * div_term))
    pe = pe.at[:, 1::2].set(jnp.cos(position * div_term))
    return pe


def reference_forward(tokens, emb, pe, wq, wk, wv, wo, bo):
    """Pure-JAX reference mirroring the PyTorch module (no weight folding)."""
    x = emb[tokens] + pe[None, :, :]
    q = jnp.einsum('nld,ed->nle', x, wq)
    k = jnp.einsum('nld,ed->nle', x, wk)
    v = jnp.einsum('nld,ed->nle', x, wv)
    score = jnp.einsum('nqe,nke->nqk', q, k) / jnp.sqrt(jnp.float32(q.shape[-1]))
    attn = jax.nn.softmax(score, axis=-1)
    values = jnp.einsum('nqk,nkd->nqd', attn, v)
    out = jnp.einsum('nqd,od->nqo', values, wo)[..., 0] + bo[0, 0]
    return out, attn


if __name__ == "__main__":
    N, L, D = 4, 10, 16  # batch, length, embedding_dim (module defaults L=10, D=16)

    key = jax.random.PRNGKey(0)
    k_tok, k_emb, k_q, k_k, k_v, k_o, k_b = jax.random.split(key, 7)

    tokens = jax.random.randint(k_tok, (N, L), 0, 2, dtype=jnp.int32)

    # Deterministic parameter init (shapes follow nn.Embedding / nn.Linear).
    emb = jax.random.normal(k_emb, (2, D), dtype=jnp.float32)          # Embedding(2, D)
    bound = 1.0 / np.sqrt(D)
    wq = jax.random.uniform(k_q, (D, D), jnp.float32, -bound, bound)   # Linear(D, D) weight
    wk = jax.random.uniform(k_k, (D, D), jnp.float32, -bound, bound)
    wv = jax.random.uniform(k_v, (D, D), jnp.float32, -bound, bound)
    wo = jax.random.uniform(k_o, (1, D), jnp.float32, -bound, bound)   # Linear(D, 1) weight
    bo = jax.random.uniform(k_b, (1, 1), jnp.float32, -bound, bound)   # Linear(D, 1) bias

    pe = sinusoidal_pe(L, D)

    out, attn = attention_forward(tokens, emb, pe, wq, wk, wv, wo, bo)
    out = jax.block_until_ready(out)
    attn = jax.block_until_ready(attn)

    ref_out, ref_attn = reference_forward(tokens, emb, pe, wq, wk, wv, wo, bo)
    assert out.shape == (N, L) and attn.shape == (N, L, L)
    # Weight folding (scale into Wq, Wo@Wv) changes FP association by ~1e-6;
    # 1e-4 keeps a tight f32 check with margin.
    np.testing.assert_allclose(np.asarray(out), np.asarray(ref_out),
                               rtol=1e-4, atol=1e-4)
    np.testing.assert_allclose(np.asarray(attn), np.asarray(ref_attn),
                               rtol=1e-4, atol=1e-4)

    print("KERNEL_OK")
</pallas_src>

<mosaic_0001>
module attributes {stable_mosaic.version = 11 : i64} {
  func.func @attention_kernel(%arg0: i32, %arg1: memref<40x1xi32, #tpu.memory_space<vmem>>, %arg2: memref<2x16xf32, #tpu.memory_space<vmem>>, %arg3: memref<40x16xf32, #tpu.memory_space<vmem>>, %arg4: memref<16x33xf32, #tpu.memory_space<vmem>>, %arg5: memref<1x1xf32, #tpu.memory_space<vmem>>, %arg6: memref<40x1xf32, #tpu.memory_space<vmem>>, %arg7: memref<40x10xf32, #tpu.memory_space<vmem>>) attributes {dimension_semantics = [#tpu.dimension_semantics<arbitrary>], iteration_bounds = array<i64: 1>, scalar_prefetch = 0 : i64, scratch_operands = 0 : i64, tpu.core_type = #tpu.core_type<tc>, window_params = [{pipeline_mode = #tpu.pipeline_mode<synchronous>, transform_indices = @transform_0, window_bounds = array<i64: 40, 1>}, {pipeline_mode = #tpu.pipeline_mode<synchronous>, transform_indices = @transform_1, window_bounds = array<i64: 2, 16>}, {pipeline_mode = #tpu.pipeline_mode<synchronous>, transform_indices = @transform_2, window_bounds = array<i64: 40, 16>}, {pipeline_mode = #tpu.pipeline_mode<synchronous>, transform_indices = @transform_3, window_bounds = array<i64: 16, 33>}, {pipeline_mode = #tpu.pipeline_mode<synchronous>, transform_indices = @transform_4, window_bounds = array<i64: 1, 1>}, {pipeline_mode = #tpu.pipeline_mode<synchronous>, transform_indices = @transform_5, window_bounds = array<i64: 40, 1>}, {pipeline_mode = #tpu.pipeline_mode<synchronous>, transform_indices = @transform_6, window_bounds = array<i64: 40, 10>}]} {
    %c0 = arith.constant 0 : index
    %c0_0 = arith.constant 0 : index
    %0 = vector.load %arg1[%c0, %c0_0] : memref<40x1xi32, #tpu.memory_space<vmem>>, vector<40x1xi32>
    %c0_1 = arith.constant 0 : index
    %c0_2 = arith.constant 0 : index
    %1 = vector.load %arg2[%c0_1, %c0_2] : memref<2x16xf32, #tpu.memory_space<vmem>>, vector<1x16xf32>
    %c1 = arith.constant 1 : index
    %c0_3 = arith.constant 0 : index
    %2 = vector.load %arg2[%c1, %c0_3] : memref<2x16xf32, #tpu.memory_space<vmem>>, vector<1x16xf32>
    %c1_i32 = arith.constant 1 : i32
    %3 = vector.broadcast %c1_i32 : i32 to vector<40x1xi32>
    %4 = arith.cmpi eq, %0, %3 : vector<40x1xi32>
    %5 = vector.shape_cast %4 : vector<40x1xi1> to vector<40x1xi1>
    %6 = vector.broadcast %5 : vector<40x1xi1> to vector<40x16xi1>
    %7 = vector.shape_cast %2 : vector<1x16xf32> to vector<1x16xf32>
    %8 = vector.broadcast %7 : vector<1x16xf32> to vector<40x16xf32>
    %9 = vector.shape_cast %1 : vector<1x16xf32> to vector<1x16xf32>
    %10 = vector.broadcast %9 : vector<1x16xf32> to vector<40x16xf32>
    %11 = arith.select %6, %8, %10 : vector<40x16xi1>, vector<40x16xf32>
    %c0_4 = arith.constant 0 : index
    %c0_5 = arith.constant 0 : index
    %12 = vector.load %arg3[%c0_4, %c0_5] : memref<40x16xf32, #tpu.memory_space<vmem>>, vector<40x16xf32>
    %13 = arith.addf %11, %12 : vector<40x16xf32>
    %c0_6 = arith.constant 0 : index
    %c0_7 = arith.constant 0 : index
    %14 = vector.load %arg4[%c0_6, %c0_7] : memref<16x33xf32, #tpu.memory_space<vmem>>, vector<16x33xf32>
    %cst = arith.constant dense<0.000000e+00> : vector<40x33xf32>
    %15 = tpu.matmul %13, %14, %cst {dimension_numbers = #tpu.dot_dimension_numbers<[1], [0], [0], [1], [0, 0, 1, 1], [], []>} : vector<40x16xf32>, vector<16x33xf32>, vector<40x33xf32> -> vector<40x33xf32>
    %c0_8 = arith.constant 0 : index
    %c0_9 = arith.constant 0 : index
    %16 = vector.load %arg5[%c0_8, %c0_9] : memref<1x1xf32, #tpu.memory_space<vmem>>, vector<1x1xf32>
    %17 = vector.extract_strided_slice %15 {offsets = [0, 0], sizes = [10, 16], strides = [1, 1]} : vector<40x33xf32> to vector<10x16xf32>
    %18 = vector.extract_strided_slice %15 {offsets = [0, 16], sizes = [10, 16], strides = [1, 1]} : vector<40x33xf32> to vector<10x16xf32>
    %19 = vector.extract_strided_slice %15 {offsets = [0, 32], sizes = [10, 1], strides = [1, 1]} : vector<40x33xf32> to vector<10x1xf32>
    %cst_10 = arith.constant dense<0.000000e+00> : vector<10x10xf32>
    %20 = tpu.matmul %17, %18, %cst_10 {dimension_numbers = #tpu.dot_dimension_numbers<[1], [1], [0], [0], [0, 0, 1, 0], [], []>} : vector<10x16xf32>, vector<10x16xf32>, vector<10x10xf32> -> vector<10x10xf32>
    %cst_11 = arith.constant dense<0xFF800000> : vector<10xf32>
    %21 = vector.multi_reduction <maximumf>, %20, %cst_11 [1] : vector<10x10xf32> to vector<10xf32>
    %22 = vector.shape_cast %21 : vector<10xf32> to vector<10x1xf32>
    %23 = vector.broadcast %22 : vector<10x1xf32> to vector<10x10xf32>
    %24 = arith.subf %20, %23 : vector<10x10xf32>
    %25 = math.exp %24 : vector<10x10xf32>
    %cst_12 = arith.constant dense<0.000000e+00> : vector<10xf32>
    %26 = vector.multi_reduction <add>, %25, %cst_12 [1] : vector<10x10xf32> to vector<10xf32>
    %27 = vector.shape_cast %26 : vector<10xf32> to vector<10x1xf32>
    %28 = tpu.reciprocal %27 : vector<10x1xf32> -> vector<10x1xf32>
    %29 = vector.broadcast %28 : vector<10x1xf32> to vector<10x10xf32>
    %30 = arith.mulf %25, %29 : vector<10x10xf32>
    %cst_13 = arith.constant dense<0.000000e+00> : vector<10x1xf32>
    %31 = tpu.matmul %30, %19, %cst_13 {dimension_numbers = #tpu.dot_dimension_numbers<[1], [0], [0], [1], [0, 0, 1, 1], [], []>} : vector<10x10xf32>, vector<10x1xf32>, vector<10x1xf32> -> vector<10x1xf32>
    %32 = vector.broadcast %16 : vector<1x1xf32> to vector<10x1xf32>
    %33 = arith.addf %31, %32 : vector<10x1xf32>
    %c0_14 = arith.constant 0 : index
    %c0_15 = arith.constant 0 : index
    %34 = vector.load %arg7[%c0_14, %c0_15] : memref<40x10xf32, #tpu.memory_space<vmem>>, vector<10x10xf32>
    tpu.vector_store %arg7[%c0_14, %c0_15], %30 {strides = array<i32>} : memref<40x10xf32, #tpu.memory_space<vmem>>, vector<10x10xf32>,
    %c0_16 = arith.constant 0 : index
    %c0_17 = arith.constant 0 : index
    %35 = vector.load %arg6[%c0_16, %c0_17] : memref<40x1xf32, #tpu.memory_space<vmem>>, vector<10x1xf32>
    tpu.vector_store %arg6[%c0_16, %c0_17], %33 {strides = array<i32>} : memref<40x1xf32, #tpu.memory_space<vmem>>, vector<10x1xf32>,
    %36 = vector.extract_strided_slice %15 {offsets = [10, 0], sizes = [10, 16], strides = [1, 1]} : vector<40x33xf32> to vector<10x16xf32>
    %37 = vector.extract_strided_slice %15 {offsets = [10, 16], sizes = [10, 16], strides = [1, 1]} : vector<40x33xf32> to vector<10x16xf32>
    %38 = vector.extract_strided_slice %15 {offsets = [10, 32], sizes = [10, 1], strides = [1, 1]} : vector<40x33xf32> to vector<10x1xf32>
    %cst_18 = arith.constant dense<0.000000e+00> : vector<10x10xf32>
    %39 = tpu.matmul %36, %37, %cst_18 {dimension_numbers = #tpu.dot_dimension_numbers<[1], [1], [0], [0], [0, 0, 1, 0], [], []>} : vector<10x16xf32>, vector<10x16xf32>, vector<10x10xf32> -> vector<10x10xf32>
    %cst_19 = arith.constant dense<0xFF800000> : vector<10xf32>
    %40 = vector.multi_reduction <maximumf>, %39, %cst_19 [1] : vector<10x10xf32> to vector<10xf32>
    %41 = vector.shape_cast %40 : vector<10xf32> to vector<10x1xf32>
    %42 = vector.broadcast %41 : vector<10x1xf32> to vector<10x10xf32>
    %43 = arith.subf %39, %42 : vector<10x10xf32>
    %44 = math.exp %43 : vector<10x10xf32>
    %cst_20 = arith.constant dense<0.000000e+00> : vector<10xf32>
    %45 = vector.multi_reduction <add>, %44, %cst_20 [1] : vector<10x10xf32> to vector<10xf32>
    %46 = vector.shape_cast %45 : vector<10xf32> to vector<10x1xf32>
    %47 = tpu.reciprocal %46 : vector<10x1xf32> -> vector<10x1xf32>
    %48 = vector.broadcast %47 : vector<10x1xf32> to vector<10x10xf32>
    %49 = arith.mulf %44, %48 : vector<10x10xf32>
    %cst_21 = arith.constant dense<0.000000e+00> : vector<10x1xf32>
    %50 = tpu.matmul %49, %38, %cst_21 {dimension_numbers = #tpu.dot_dimension_numbers<[1], [0], [0], [1], [0, 0, 1, 1], [], []>} : vector<10x10xf32>, vector<10x1xf32>, vector<10x1xf32> -> vector<10x1xf32>
    %51 = vector.broadcast %16 : vector<1x1xf32> to vector<10x1xf32>
    %52 = arith.addf %50, %51 : vector<10x1xf32>
    %c10 = arith.constant 10 : index
    %c0_22 = arith.constant 0 : index
    %53 = vector.load %arg7[%c10, %c0_22] : memref<40x10xf32, #tpu.memory_space<vmem>>, vector<10x10xf32>
    tpu.vector_store %arg7[%c10, %c0_22], %49 {strides = array<i32>} : memref<40x10xf32, #tpu.memory_space<vmem>>, vector<10x10xf32>,
    %c10_23 = arith.constant 10 : index
    %c0_24 = arith.constant 0 : index
    %54 = vector.load %arg6[%c10_23, %c0_24] : memref<40x1xf32, #tpu.memory_space<vmem>>, vector<10x1xf32>
    tpu.vector_store %arg6[%c10_23, %c0_24], %52 {strides = array<i32>} : memref<40x1xf32, #tpu.memory_space<vmem>>, vector<10x1xf32>,
    %55 = vector.extract_strided_slice %15 {offsets = [20, 0], sizes = [10, 16], strides = [1, 1]} : vector<40x33xf32> to vector<10x16xf32>
    %56 = vector.extract_strided_slice %15 {offsets = [20, 16], sizes = [10, 16], strides = [1, 1]} : vector<40x33xf32> to vector<10x16xf32>
    %57 = vector.extract_strided_slice %15 {offsets = [20, 32], sizes = [10, 1], strides = [1, 1]} : vector<40x33xf32> to vector<10x1xf32>
    %cst_25 = arith.constant dense<0.000000e+00> : vector<10x10xf32>
    %58 = tpu.matmul %55, %56, %cst_25 {dimension_numbers = #tpu.dot_dimension_numbers<[1], [1], [0], [0], [0, 0, 1, 0], [], []>} : vector<10x16xf32>, vector<10x16xf32>, vector<10x10xf32> -> vector<10x10xf32>
    %cst_26 = arith.constant dense<0xFF800000> : vector<10xf32>
    %59 = vector.multi_reduction <maximumf>, %58, %cst_26 [1] : vector<10x10xf32> to vector<10xf32>
    %60 = vector.shape_cast %59 : vector<10xf32> to vector<10x1xf32>
    %61 = vector.broadcast %60 : vector<10x1xf32> to vector<10x10xf32>
    %62 = arith.subf %58, %61 : vector<10x10xf32>
    %63 = math.exp %62 : vector<10x10xf32>
    %cst_27 = arith.constant dense<0.000000e+00> : vector<10xf32>
    %64 = vector.multi_reduction <add>, %63, %cst_27 [1] : vector<10x10xf32> to vector<10xf32>
    %65 = vector.shape_cast %64 : vector<10xf32> to vector<10x1xf32>
    %66 = tpu.reciprocal %65 : vector<10x1xf32> -> vector<10x1xf32>
    %67 = vector.broadcast %66 : vector<10x1xf32> to vector<10x10xf32>
    %68 = arith.mulf %63, %67 : vector<10x10xf32>
    %cst_28 = arith.constant dense<0.000000e+00> : vector<10x1xf32>
    %69 = tpu.matmul %68, %57, %cst_28 {dimension_numbers = #tpu.dot_dimension_numbers<[1], [0], [0], [1], [0, 0, 1, 1], [], []>} : vector<10x10xf32>, vector<10x1xf32>, vector<10x1xf32> -> vector<10x1xf32>
    %70 = vector.broadcast %16 : vector<1x1xf32> to vector<10x1xf32>
    %71 = arith.addf %69, %70 : vector<10x1xf32>
    %c20 = arith.constant 20 : index
    %c0_29 = arith.constant 0 : index
    %72 = vector.load %arg7[%c20, %c0_29] : memref<40x10xf32, #tpu.memory_space<vmem>>, vector<10x10xf32>
    tpu.vector_store %arg7[%c20, %c0_29], %68 {strides = array<i32>} : memref<40x10xf32, #tpu.memory_space<vmem>>, vector<10x10xf32>,
    %c20_30 = arith.constant 20 : index
    %c0_31 = arith.constant 0 : index
    %73 = vector.load %arg6[%c20_30, %c0_31] : memref<40x1xf32, #tpu.memory_space<vmem>>, vector<10x1xf32>
    tpu.vector_store %arg6[%c20_30, %c0_31], %71 {strides = array<i32>} : memref<40x1xf32, #tpu.memory_space<vmem>>, vector<10x1xf32>,
    %74 = vector.extract_strided_slice %15 {offsets = [30, 0], sizes = [10, 16], strides = [1, 1]} : vector<40x33xf32> to vector<10x16xf32>
    %75 = vector.extract_strided_slice %15 {offsets = [30, 16], sizes = [10, 16], strides = [1, 1]} : vector<40x33xf32> to vector<10x16xf32>
    %76 = vector.extract_strided_slice %15 {offsets = [30, 32], sizes = [10, 1], strides = [1, 1]} : vector<40x33xf32> to vector<10x1xf32>
    %cst_32 = arith.constant dense<0.000000e+00> : vector<10x10xf32>
    %77 = tpu.matmul %74, %75, %cst_32 {dimension_numbers = #tpu.dot_dimension_numbers<[1], [1], [0], [0], [0, 0, 1, 0], [], []>} : vector<10x16xf32>, vector<10x16xf32>, vector<10x10xf32> -> vector<10x10xf32>
    %cst_33 = arith.constant dense<0xFF800000> : vector<10xf32>
    %78 = vector.multi_reduction <maximumf>, %77, %cst_33 [1] : vector<10x10xf32> to vector<10xf32>
    %79 = vector.shape_cast %78 : vector<10xf32> to vector<10x1xf32>
    %80 = vector.broadcast %79 : vector<10x1xf32> to vector<10x10xf32>
    %81 = arith.subf %77, %80 : vector<10x10xf32>
    %82 = math.exp %81 : vector<10x10xf32>
    %cst_34 = arith.constant dense<0.000000e+00> : vector<10xf32>
    %83 = vector.multi_reduction <add>, %82, %cst_34 [1] : vector<10x10xf32> to vector<10xf32>
    %84 = vector.shape_cast %83 : vector<10xf32> to vector<10x1xf32>
    %85 = tpu.reciprocal %84 : vector<10x1xf32> -> vector<10x1xf32>
    %86 = vector.broadcast %85 : vector<10x1xf32> to vector<10x10xf32>
    %87 = arith.mulf %82, %86 : vector<10x10xf32>
    %cst_35 = arith.constant dense<0.000000e+00> : vector<10x1xf32>
    %88 = tpu.matmul %87, %76, %cst_35 {dimension_numbers = #tpu.dot_dimension_numbers<[1], [0], [0], [1], [0, 0, 1, 1], [], []>} : vector<10x10xf32>, vector<10x1xf32>, vector<10x1xf32> -> vector<10x1xf32>
    %89 = vector.broadcast %16 : vector<1x1xf32> to vector<10x1xf32>
    %90 = arith.addf %88, %89 : vector<10x1xf32>
    %c30 = arith.constant 30 : index
    %c0_36 = arith.constant 0 : index
    %91 = vector.load %arg7[%c30, %c0_36] : memref<40x10xf32, #tpu.memory_space<vmem>>, vector<10x10xf32>
    tpu.vector_store %arg7[%c30, %c0_36], %87 {strides = array<i32>} : memref<40x10xf32, #tpu.memory_space<vmem>>, vector<10x10xf32>,
    %c30_37 = arith.constant 30 : index
    %c0_38 = arith.constant 0 : index
    %92 = vector.load %arg6[%c30_37, %c0_38] : memref<40x1xf32, #tpu.memory_space<vmem>>, vector<10x1xf32>
    tpu.vector_store %arg6[%c30_37, %c0_38], %90 {strides = array<i32>} : memref<40x1xf32, #tpu.memory_space<vmem>>, vector<10x1xf32>,
    return
  }
  func.func @transform_0(%arg0: i32) -> (i32, i32) {
    %c0_i32 = arith.constant 0 : i32
    %c0_i32_0 = arith.constant 0 : i32
    %c0_i32_1 = arith.constant 0 : i32
    return %c0_i32, %c0_i32_0 : i32, i32
  }
  func.func @transform_1(%arg0: i32) -> (i32, i32) {
    %c0_i32 = arith.constant 0 : i32
    %c0_i32_0 = arith.constant 0 : i32
    %c0_i32_1 = arith.constant 0 : i32
    return %c0_i32, %c0_i32_0 : i32, i32
  }
  func.func @transform_2(%arg0: i32) -> (i32, i32) {
    %c0_i32 = arith.constant 0 : i32
    %c0_i32_0 = arith.constant 0 : i32
    %c0_i32_1 = arith.constant 0 : i32
    return %c0_i32, %c0_i32_0 : i32, i32
  }
  func.func @transform_3(%arg0: i32) -> (i32, i32) {
    %c0_i32 = arith.constant 0 : i32
    %c0_i32_0 = arith.constant 0 : i32
    %c0_i32_1 = arith.constant 0 : i32
    return %c0_i32, %c0_i32_0 : i32, i32
  }
  func.func @transform_4(%arg0: i32) -> (i32, i32) {
    %c0_i32 = arith.constant 0 : i32
    %c0_i32_0 = arith.constant 0 : i32
    %c0_i32_1 = arith.constant 0 : i32
    return %c0_i32, %c0_i32_0 : i32, i32
  }
  func.func @transform_5(%arg0: i32) -> (i32, i32) {
    %c0_i32 = arith.constant 0 : i32
    %c0_i32_0 = arith.constant 0 : i32
    %c0_i32_1 = arith.constant 0 : i32
    return %c0_i32, %c0_i32_0 : i32, i32
  }
  func.func @transform_6(%arg0: i32) -> (i32, i32) {
    %c0_i32 = arith.constant 0 : i32
    %c0_i32_0 = arith.constant 0 : i32
    %c0_i32_1 = arith.constant 0 : i32
    return %c0_i32, %c0_i32_0 : i32, i32
  }
}

</mosaic_0001>

<bundles_post_ra>
// kernel: tpu_custom_call.1
= control target key start
LH: loop header
LB: loop body
LE: loop exit
PB: predicated region body
PF: predicated region fallthrough
CT: control target
= control target key end

     0   :  { %v1221_v0 = vmov 0   ;;  %v1222_v3 = vmov 0.0   ;;  %vm1223_vm2 = vmmov 0   ;;  %vm86_vm5 = vcmask 130048   ;;  %s1224_s17 = smov 112   ;;  %s1225_s20 = smov 96   ;;  %s1533_s0 = inlined_call_operand.vmem [shape: s32[40,1], index: 0, kind: input, shape index: {}]   ;;  %s1534_s3 = inlined_call_operand.vmem [shape: f32[16,33], index: 3, kind: input, shape index: {}]   ;;  %s1535_s1 = inlined_call_operand.vmem [shape: f32[2,16], index: 1, kind: input, shape index: {}]   ;;  %s1536_s2 = inlined_call_operand.vmem [shape: f32[40,16], index: 2, kind: input, shape index: {}]   ;;  %s1537_s4 = inlined_call_operand.<no memory space> [shape: f32[1,1], index: 4, kind: input, shape index: {}]   ;;  %s1538_s6 = inlined_call_operand.vmem [shape: f32[40,10], index: 6, kind: output, shape index: {1}]   ;;  %s1539_s5 = inlined_call_operand.vmem [shape: f32[40,1], index: 5, kind: output, shape index: {0}]  }
   0x1   :  { %1187 = vset.pattern.permute.xlu0 %v1221_v0  ;;  %v24_v1 = vld [vmem:[%s1533_s0] sm:$0xff]  ;;  %v25_v2 = vld [vmem:[%s1533_s0 + $0x8] sm:$0xff]  ;;  %1107 = vmatprep.subr.mxu0 %v1222_v3  ;;  %v26_v5 = vld [vmem:[%s1533_s0 + $0x10] sm:$0xff]  ;;  %vm286_vm10 = vcmask 74752   ;;  %vm282_vm11 = vcmask 80896   ;;  %vm408_vm12 = vcmask 1045504   ;;  %v12_v63 = vstv %s1537_s4 }
   0x2   :  { %vm31_vm0 = vcmp.eq.s32.totalorder %v24_v1, 1  ;;  %vm32_vm1 = vcmp.eq.s32.totalorder %v25_v2, 1  ;;  %1188 = vset.pattern.permute.xlu1 %v1221_v0  ;;  %v85_v6 = vld [vmem:[%s1534_s3 + $0x8] sm:$0xff]  ;;  %v84_v7 = vld [vmem:[%s1534_s3] sm:$0xff]  ;;  %1111 = vmatprep.mubr.msk.f32.mxu0 %vm1223_vm2, %v1222_v3  ;;  %vm33_vm3 = vcmp.eq.s32.totalorder %v26_v5, 1  ;;  %v76_v20 = vld [vmem:[%s1536_s2 + $0x10] sm:$0xff] }
   0x3   :  { %v36_v4 = vsel %vm31_vm0, 1, %v1221_v0  ;;  %1108 = vmatpush3.msra.mxu0 %v85_v6  ;;  %v37_v8 = vsel %vm32_vm1, 1, %v1221_v0  ;;  %v38_v9 = vsel %vm33_vm3, 1, %v1221_v0  ;;  %v1288_v10 = vld [vmem:[%s1535_s1] ss:$0 sm:$0xff]  ;;  %v75_v16 = vld [vmem:[%s1536_s2 + $0x8] sm:$0xff] }
   0x4   :  { %42 = vperm.xlu0 %1187, %v36_v4   ;;  %1109 = vmatprep.subr.mxu0 %v1222_v3  ;;  %v1293_v11 = vld [vmem:[%s1535_s1 + $0x1] ss:$0 sm:$0xff]  ;;  %v27_v27 = vld [vmem:[%s1533_s0 + $0x18] sm:$0xff]  ;;  %vm614_vm13 = vcmask 1043456   ;;  %vm323_vm14 = vcmask 1041408   ;;  %vm405_vm1 = vcmask 1024  }
   0x5   :  { %1110 = vmatpush3.msra.mxu0 %v84_v7  ;;  %v74_v12 = vld [vmem:[%s1536_s2] sm:$0xff]  ;;  %vm34_vm8 = vcmp.eq.s32.totalorder %v27_v27, 1  ;;  %v77_v34 = vld [vmem:[%s1536_s2 + $0x18] sm:$0xff]  ;;  %13 = vst [vmem:[#allocation2] sm:$0x1] %v12_v63 }
   0x6   :  { %v39_v31 = vsel %vm34_vm8, 1, %v1221_v0  ;;  %v28_v61 = vld [vmem:[%s1533_s0 + $0x20] sm:$0xff] }
   0x7   :  { %vm35_vm15 = vcmp.eq.s32.totalorder %v28_v61, 1 }
   0x8   :  { %45 = vperm.xlu0 %1187, %v37_v8   ;;  %v40_v62 = vsel %vm35_vm15, 1, %v1221_v0 }
   0xc   :  { %48 = vperm.xlu0 %1187, %v38_v9   ;;  %v78_v9 = vld [vmem:[%s1536_s2 + $0x20] sm:$0xff] }
  0x7f   :  { %v43_v13 = vpop.permute.xlu0 %42 }
  0x80   :  { %vm56_vm4 = vcmp.eq.s32.totalorder %v43_v13, 1 }
  0x81   :  { %v69_v14 = vsel %vm56_vm4, %v1293_v11, %v1288_v10 }
  0x82   :  { %v79_v15 = vadd.f32 %v74_v12, %v69_v14 }
  0x83   :  { %v46_v17 = vpop.permute.xlu0 %45 }
  0x84   :  { %vm57_vm6 = vcmp.eq.s32.totalorder %v46_v17, 1  ;;  %1112 = vmatmul.mubr.msk.f32.vlgmr.msra.gmra.mxu0 %vm86_vm5, %v79_v15 }
  0x85   :  { %v70_v18 = vsel %vm57_vm6, %v1293_v11, %v1288_v10  ;;  %1114 = vmatprep.mubr.msk.f32.mxu0 %vm1223_vm2, %v1222_v3 }
  0x86   :  { %v80_v19 = vadd.f32 %v75_v16, %v70_v18 }
  0x87   :  { %v49_v21 = vpop.permute.xlu0 %48 }
  0x88   :  { %vm58_vm7 = vcmp.eq.s32.totalorder %v49_v21, 1  ;;  %1115 = vmatmul.mubr.msk.f32.gmra.mxu0 %vm86_vm5, %v80_v19 }
  0x89   :  { %v71_v22 = vsel %vm58_vm7, %v1293_v11, %v1288_v10  ;;  %1117 = vmatprep.mubr.msk.f32.mxu0 %vm1223_vm2, %v1222_v3 }
  0x8a   :  { %v81_v23 = vadd.f32 %v76_v20, %v71_v22 }
  0x8c   :  { %1118 = vmatmul.mubr.msk.f32.gmra.mxu0 %vm86_vm5, %v81_v23 }
  0x8d   :  { %1120 = vmatprep.mubr.msk.f32.mxu0 %vm1223_vm2, %v1222_v3 }
 0x144   :  { %v1319_v24 = vpop.f32.mrf.mxu0 }
 0x145   :  { %1130 = vmatprep.mubr.msk.f32.mxu1 %vm86_vm5, %v1319_v24 }
 0x146   :  { %v1113_v25 = vpop.f32.mrf.mxu0 }
 0x148   :  { %v173_v26 = vpop.f32.mrf.mxu0 }
 0x149   :  { %197 = vrot.lane.b32.xlu1 %v173_v26, %s1224_s17  ;;  %v409_v45 = vrot.slane %v173_v26, 2 }
 0x14a   :  { %v1116_v28 = vpop.f32.mrf.mxu0 }
 0x14c   :  { %v178_v29 = vpop.f32.mrf.mxu0 }
 0x14d   :  { %195 = vrot.lane.b32.xlu1 %v1319_v24, %s1224_s17  ;;  %v1348_v44 = vrot.slane %v178_v29, 2  ;;  %v615_v48 = vrot.slane %v178_v29, 4 }
 0x14e   :  { %v1119_v30 = vpop.f32.mrf.mxu0 }
 0x14f   :  { %v1356_v47 = vsel %vm408_vm12, %v409_v45, %v1348_v44 }
 0x151   :  { %51 = vperm.xlu1 %1188, %v39_v31  }
 0x1bb   :  { %v198_v32 = vpop.permute.xlu1 %197 }
 0x1bc   :  { %1126 = vmatprep.subr.msk.mxu1 %vm86_vm5, %v198_v32 }
 0x1bd   :  { %1127 = vmatpush3.xpose.msk.msra.mxu1 %vm86_vm5, %v198_v32 }
 0x1bf   :  { %v196_v33 = vpop.permute.xlu1 %195 }
 0x1c0   :  { %1128 = vmatprep.subr.msk.mxu1 %vm86_vm5, %v196_v33 }
 0x1c1   :  { %1129 = vmatpush3.xpose.msk.msra.mxu1 %vm86_vm5, %v196_v33 }
 0x1c4   :  { %1131 = vmatmul.mubr.msk.f32.vlgmr.msra.gmra.mxu1 %vm86_vm5, %v173_v26 }
 0x1cc   :  { %v52_v35 = vpop.permute.xlu1 %51 }
 0x1cd   :  { %vm59_vm9 = vcmp.eq.s32.totalorder %v52_v35, 1 }
 0x1ce   :  { %v72_v36 = vsel %vm59_vm9, %v1293_v11, %v1288_v10 }
 0x1cf   :  { %v82_v37 = vadd.f32 %v77_v34, %v72_v36 }
 0x1d1   :  { %1121 = vmatmul.mubr.msk.f32.gmra.mxu0 %vm86_vm5, %v82_v37 }
 0x1d2   :  { %1123 = vmatprep.mubr.msk.f32.mxu0 %vm1223_vm2, %v1222_v3  ;;  %vm403_vm2 = vcmask 7168  }
 0x284   :  { %v1132_v38 = vpop.f32.mrf.mxu1 }
 0x285   :  { %v287_v39 = vsel %vm286_vm10, %v1132_v38, -inf }
 0x286   :  { %288 = vmax.xlane.f32.xlu1 %v287_v39  ;;  %v273_v40 = vpop.f32.mrf.mxu1 }
 0x287   :  { %v283_v41 = vsel %vm282_vm11, %v273_v40, -inf }
 0x288   :  { %284 = vmax.xlane.f32.xlu0 %v283_v41 }
 0x291   :  { %v1345_v42 = vpop.f32.mrf.mxu0 }
 0x292   :  { %v1353_v46 = vrot.slane %v1345_v42, 4 }
 0x293   :  { %v1122_v43 = vpop.f32.mrf.mxu0 }
 0x294   :  { %v1361_v49 = vsel %vm614_vm13, %v615_v48, %v1353_v46 }
 0x297   :  { %314 = vrot.lane.b32.xlu1 %v173_v26, %s1225_s20 }
 0x29b   :  { %414 = vrot.lane.b32.xlu1 %v1348_v44, %s1224_s17 }
 0x29f   :  { %412 = vrot.lane.b32.xlu1 %v1356_v47, %s1224_s17 }
 0x2a3   :  { %618 = vrot.lane.b32.xlu1 %v1361_v49, %s1224_s17 }
 0x30f   :  { %v289_v50 = vpop.xlane.xlu1 %288 }
 0x310   :  { %v291_v51 = vsub.f32 %v1132_v38, %v289_v50 }
 0x311   :  { %v285_v52 = vpop.xlane.xlu0 %284 }
 0x312   :  { %v294_v53 = vmul.f32 1.442695, %v291_v51  ;;  %v290_v54 = vsub.f32 %v273_v40, %v285_v52 }
 0x313   :  { %v315_v55 = vpop.permute.xlu1 %314 }
 0x314   :  { %1189 = vpow2.f32 %v294_v53  ;;  %v292_v56 = vmul.f32 1.442695, %v290_v54  ;;  %1133 = vmatprep.subr.msk.mxu1 %vm323_vm14, %v315_v55 }
 0x315   :  { %1134 = vmatpush3.msk.msra.mxu1 %vm323_vm14, %v315_v55 }
 0x316   :  { %1191 = vpow2.f32 %v292_v56  ;;  %v820_v56 = vrot.slane %v1345_v42, 6 }
 0x317   :  { %v415_v4 = vpop.permute.xlu1 %414 }
 0x31b   :  { %v413_v14 = vpop.permute.xlu1 %412 }
 0x321   :  { %v1190_v57 = vpop.eup %1189 }
 0x322   :  { %v299_v58 = vsel %vm286_vm10, %v1190_v57, 0.0 }
 0x323   :  { %v1192_v59 = vpop.eup %1191  ;;  %300 = vadd.xlane.f32.xlu0 %v299_v58 }
 0x324   :  { %v296_v60 = vsel %vm282_vm11, %v1192_v59, 0.0 }
 0x327   :  { %297 = vadd.xlane.f32.xlu0 %v296_v60 }
 0x33d   :  { %312 = vrot.lane.b32.xlu0 %v1319_v24, %s1225_s20 }
 0x341   :  { %620 = vrot.lane.b32.xlu0 %v1353_v46, %s1224_s17 }
 0x345   :  { %54 = vperm.xlu0 %1187, %v40_v62  }
 0x3ac   :  { %v301_v1 = vpop.xlane.xlu0 %300 }
 0x3ad   :  { %1193 = vrcp.f32 %v301_v1 }
 0x3b0   :  { %v298_v2 = vpop.xlane.xlu0 %297 }
 0x3b1   :  { %1195 = vrcp.f32 %v298_v2 }
 0x3b4   :  { %v313_v3 = vpop.permute.xlu0 %312 }
 0x3b5   :  { %1135 = vmatprep.subr.mxu1 %v313_v3 }
 0x3b6   :  { %1136 = vmatpush3.msra.mxu1 %v313_v3 }
 0x3b7   :  { %1140 = vmatprep.subr.msk.mxu1 %vm86_vm5, %v415_v4 }
 0x3b8   :  { %v621_v6 = vpop.permute.xlu0 %620 }
 0x3ba   :  { %v1194_v5 = vpop.eup %1193 }
 0x3bb   :  { %v305_v7 = vmul.f32 %v1194_v5, %v1190_v57 }
 0x3bd   :  { %402 = vst.msk [vmem:[%s1538_s6 + $0x8] sm:$0x3] %vm286_vm10, %v305_v7 }
 0x3be   :  { %v1196_v0 = vpop.eup %1195 }
 0x3bf   :  { %v304_v8 = vmul.f32 %v1196_v0, %v1192_v59 }
 0x3c0   :  { %v55_v12 = vpop.permute.xlu0 %54 }
 0x3c1   :  { %vm60_vm0 = vcmp.eq.s32.totalorder %v55_v12, 1  ;;  %1137 = vmatprep.mubr.msk.f32.mxu1 %vm282_vm11, %v304_v8  ;;  %401 = vst.msk [vmem:[%s1538_s6] sm:$0xff] %vm282_vm11, %v304_v8 }
 0x3c2   :  { %v73_v13 = vsel %vm60_vm0, %v1293_v11, %v1288_v10  ;;  %1138 = vmatmul.mubr.msk.f32.vlgmr.msra.gmra.mxu1 %vm282_vm11, %v305_v7  ;;  %v619_v10 = vpop.permute.xlu1 %618  ;;  %v1412_v11 = vld [vmem:[#allocation2] ss:$0 sm:$0xff] }
 0x3c3   :  { %v83_v15 = vadd.f32 %v78_v9, %v73_v13  ;;  %1141 = vmatpush3.xpose.msk.msra.mxu1 %vm86_vm5, %v415_v4  ;;  %1144 = vmatprep.mubr.msk.f32.mxu1 %vm86_vm5, %v1356_v47 }
 0x3c4   :  { %1142 = vmatprep.subr.msk.mxu1 %vm86_vm5, %v413_v14 }
 0x3c5   :  { %1124 = vmatmul.mubr.msk.f32.gmra.mxu0 %vm86_vm5, %v83_v15 }
 0x3c7   :  { %1143 = vmatpush3.xpose.msk.msra.mxu1 %vm86_vm5, %v413_v14 }
 0x3c8   :  { %1154 = vmatprep.subr.msk.mxu1 %vm86_vm5, %v621_v6 }
 0x3ca   :  { %1145 = vmatmul.mubr.msk.f32.vlgmr.msra.gmra.mxu1 %vm86_vm5, %v1348_v44 }
 0x3cb   :  { %1155 = vmatpush3.xpose.msk.msra.mxu1 %vm86_vm5, %v621_v6  ;;  %1158 = vmatprep.mubr.msk.f32.mxu1 %vm86_vm5, %v1361_v49 }
 0x3cc   :  { %1156 = vmatprep.subr.msk.mxu1 %vm86_vm5, %v619_v10 }
 0x3cf   :  { %1157 = vmatpush3.xpose.msk.msra.mxu1 %vm86_vm5, %v619_v10 }
 0x3d2   :  { %1159 = vmatmul.mubr.msk.f32.vlgmr.msra.gmra.mxu1 %vm86_vm5, %v1353_v46 }
 0x482   :  { %v1139_v16 = vpop.f32.mrf.mxu1 }
 0x483   :  { %v398_v17 = vadd.f32 %v1139_v16, %v1412_v11 }
 0x484   :  { %v392_v18 = vpop.f32.mrf.mxu1 }
 0x485   :  { %406 = vst.msk [vmem:[%s1539_s5 + $0x8] sm:$0x3] %vm405_vm1, %v398_v17  ;;  %v393_v19 = vadd.f32 %v1412_v11, %v392_v18  ;;  %v188_v20 = vpop.f32.mrf.mxu0 }
 0x486   :  { %v1441_v55 = vrot.slane %v188_v20, 6 }
 0x487   :  { %404 = vst.msk [vmem:[%s1539_s5] sm:$0xff] %vm403_vm2, %v393_v19  ;;  %v1125_v21 = vpop.f32.mrf.mxu0 }
 0x488   :  { %v1450_v57 = vsel %vm323_vm14, %v820_v56, %v1441_v55 }
 0x48a   :  { %v1146_v22 = vpop.f32.mrf.mxu1 }
 0x48b   :  { %v502_v23 = vsel %vm286_vm10, %v1146_v22, -inf }
 0x48c   :  { %503 = vmax.xlane.f32.xlu0 %v502_v23  ;;  %v490_v24 = vpop.f32.mrf.mxu1 }
 0x48d   :  { %v499_v25 = vsel %vm282_vm11, %v490_v24, -inf }
 0x48e   :  { %500 = vmax.xlane.f32.xlu1 %v499_v25 }
 0x492   :  { %v1160_v26 = vpop.f32.mrf.mxu1 }
 0x493   :  { %v708_v27 = vsel %vm286_vm10, %v1160_v26, -inf }
 0x494   :  { %709 = vmax.xlane.f32.xlu1 %v708_v27  ;;  %v696_v28 = vpop.f32.mrf.mxu1 }
 0x495   :  { %v705_v29 = vsel %vm282_vm11, %v696_v28, -inf }
 0x496   :  { %706 = vmax.xlane.f32.xlu0 %v705_v29 }
 0x4a5   :  { %521 = vrot.lane.b32.xlu1 %v1356_v47, %s1225_s20 }
 0x4a9   :  { %729 = vrot.lane.b32.xlu1 %v1353_v46, %s1225_s20 }
 0x4ac   :  { %523 = vrot.lane.b32.xlu0 %v1348_v44, %s1225_s20 }
 0x515   :  { %v504_v30 = vpop.xlane.xlu0 %503 }
 0x516   :  { %v506_v31 = vsub.f32 %v1146_v22, %v504_v30 }
 0x517   :  { %v501_v32 = vpop.xlane.xlu1 %500 }
 0x518   :  { %v509_v33 = vmul.f32 1.442695, %v506_v31  ;;  %v505_v34 = vsub.f32 %v490_v24, %v501_v32 }
 0x51a   :  { %1197 = vpow2.f32 %v509_v33  ;;  %v507_v35 = vmul.f32 1.442695, %v505_v34 }
 0x51c   :  { %1199 = vpow2.f32 %v507_v35 }
 0x51d   :  { %v710_v36 = vpop.xlane.xlu1 %709 }
 0x51e   :  { %v712_v37 = vsub.f32 %v1160_v26, %v710_v36 }
 0x51f   :  { %v707_v38 = vpop.xlane.xlu0 %706 }
 0x520   :  { %v715_v39 = vmul.f32 1.442695, %v712_v37  ;;  %v711_v40 = vsub.f32 %v696_v28, %v707_v38 }
 0x521   :  { %v522_v41 = vpop.permute.xlu1 %521 }
 0x522   :  { %1201 = vpow2.f32 %v715_v39  ;;  %v713_v43 = vmul.f32 1.442695, %v711_v40 }
 0x523   :  { %v524_v45 = vpop.permute.xlu0 %523 }
 0x524   :  { %1203 = vpow2.f32 %v713_v43  ;;  %1147 = vmatprep.subr.msk.mxu0 %vm323_vm14, %v524_v45 }
 0x525   :  { %1148 = vmatpush3.msk.msra.mxu0 %vm323_vm14, %v524_v45  ;;  %v730_v46 = vpop.permute.xlu1 %729 }
 0x526   :  { %1149 = vmatprep.subr.mxu0 %v522_v41 }
 0x527   :  { %v1198_v44 = vpop.eup %1197  ;;  %1150 = vmatpush3.msra.mxu0 %v522_v41 }
 0x528   :  { %1161 = vmatprep.subr.msk.mxu0 %vm323_vm14, %v730_v46  ;;  %v514_v47 = vsel %vm286_vm10, %v1198_v44, 0.0 }
 0x529   :  { %v1200_v48 = vpop.eup %1199  ;;  %515 = vadd.xlane.f32.xlu1 %v514_v47 }
 0x52a   :  { %v511_v50 = vsel %vm282_vm11, %v1200_v48, 0.0 }
 0x52b   :  { %512 = vadd.xlane.f32.xlu0 %v511_v50 }
 0x52f   :  { %v1202_v51 = vpop.eup %1201 }
 0x530   :  { %v720_v52 = vsel %vm286_vm10, %v1202_v51, 0.0 }
 0x531   :  { %v1204_v53 = vpop.eup %1203  ;;  %721 = vadd.xlane.f32.xlu1 %v720_v52 }
 0x532   :  { %v717_v54 = vsel %vm282_vm11, %v1204_v53, 0.0 }
 0x533   :  { %718 = vadd.xlane.f32.xlu0 %v717_v54 }
 0x542   :  { %825 = vrot.lane.b32.xlu1 %v1441_v55, %s1224_s17 }
 0x549   :  { %727 = vrot.lane.b32.xlu0 %v1361_v49, %s1225_s20 }
 0x54d   :  { %823 = vrot.lane.b32.xlu0 %v1450_v57, %s1224_s17 }
 0x5b2   :  { %v516_v58 = vpop.xlane.xlu1 %515 }
 0x5b3   :  { %1205 = vrcp.f32 %v516_v58 }
 0x5b4   :  { %v513_v59 = vpop.xlane.xlu0 %512 }
 0x5b5   :  { %1207 = vrcp.f32 %v513_v59 }
 0x5ba   :  { %v722_v60 = vpop.xlane.xlu1 %721 }
 0x5bb   :  { %1209 = vrcp.f32 %v722_v60 }
 0x5bc   :  { %v719_v61 = vpop.xlane.xlu0 %718 }
 0x5bd   :  { %1211 = vrcp.f32 %v719_v61 }
 0x5be   :  { %v826_v3 = vpop.permute.xlu1 %825 }
 0x5c0   :  { %v1206_v62 = vpop.eup %1205  ;;  %v728_v1 = vpop.permute.xlu0 %727 }
 0x5c1   :  { %v520_v63 = vmul.f32 %v1206_v62, %v1198_v44 }
 0x5c2   :  { %v1208_v49 = vpop.eup %1207 }
 0x5c3   :  { %610 = vst.msk [vmem:[%s1538_s6 + $0x12] sm:$0x3] %vm286_vm10, %v520_v63  ;;  %v519_v42 = vmul.f32 %v1208_v49, %v1200_v48 }
 0x5c4   :  { %v824_v7 = vpop.permute.xlu0 %823 }
 0x5c5   :  { %1151 = vmatprep.mubr.msk.f32.mxu0 %vm282_vm11, %v519_v42  ;;  %609 = vst.msk [vmem:[%s1538_s6 + $0xa] sm:$0xff] %vm282_vm11, %v519_v42 }
 0x5c6   :  { %1152 = vmatmul.mubr.msk.f32.vlgmr.msra.gmra.mxu0 %vm282_vm11, %v520_v63 }
 0x5c7   :  { %1162 = vmatpush3.msk.msra.mxu0 %vm323_vm14, %v730_v46 }
 0x5c8   :  { %v1210_v2 = vpop.eup %1209  ;;  %1163 = vmatprep.subr.mxu0 %v728_v1 }
 0x5c9   :  { %1164 = vmatpush3.msra.mxu0 %v728_v1  ;;  %v726_v4 = vmul.f32 %v1210_v2, %v1202_v51 }
 0x5ca   :  { %v1212_v5 = vpop.eup %1211  ;;  %1168 = vmatprep.subr.msk.mxu0 %vm86_vm5, %v826_v3 }
 0x5cb   :  { %v725_v6 = vmul.f32 %v1212_v5, %v1204_v53  ;;  %816 = vst.msk [vmem:[%s1538_s6 + $0x1c] sm:$0x3] %vm286_vm10, %v726_v4 }
 0x5cd   :  { %1165 = vmatprep.mubr.msk.f32.mxu0 %vm282_vm11, %v725_v6  ;;  %815 = vst.msk [vmem:[%s1538_s6 + $0x14] sm:$0xff] %vm282_vm11, %v725_v6 }
 0x5ce   :  { %1166 = vmatmul.mubr.msk.f32.vlgmr.msra.gmra.mxu0 %vm282_vm11, %v726_v4 }
 0x5cf   :  { %1169 = vmatpush3.xpose.msk.msra.mxu0 %vm86_vm5, %v826_v3  ;;  %1172 = vmatprep.mubr.msk.f32.mxu0 %vm86_vm5, %v1450_v57 }
 0x5d0   :  { %1170 = vmatprep.subr.msk.mxu0 %vm86_vm5, %v824_v7 }
 0x5d3   :  { %1171 = vmatpush3.xpose.msk.msra.mxu0 %vm86_vm5, %v824_v7 }
 0x5d6   :  { %1173 = vmatmul.mubr.msk.f32.vlgmr.msra.gmra.mxu0 %vm86_vm5, %v1441_v55 }
 0x686   :  { %v1153_v0 = vpop.f32.mrf.mxu0 }
 0x687   :  { %v606_v8 = vadd.f32 %v1153_v0, %v1412_v11 }
 0x688   :  { %v600_v9 = vpop.f32.mrf.mxu0 }
 0x689   :  { %612 = vst.msk [vmem:[%s1539_s5 + $0x12] sm:$0x3] %vm405_vm1, %v606_v8  ;;  %v601_v12 = vadd.f32 %v1412_v11, %v600_v9 }
 0x68b   :  { %611 = vst.msk [vmem:[%s1539_s5 + $0xa] sm:$0xff] %vm403_vm2, %v601_v12 }
 0x68e   :  { %v1167_v13 = vpop.f32.mrf.mxu0 }
 0x68f   :  { %v812_v14 = vadd.f32 %v1167_v13, %v1412_v11 }
 0x690   :  { %v806_v15 = vpop.f32.mrf.mxu0 }
 0x691   :  { %818 = vst.msk [vmem:[%s1539_s5 + $0x1c] sm:$0x3] %vm405_vm1, %v812_v14  ;;  %v807_v10 = vadd.f32 %v1412_v11, %v806_v15 }
 0x693   :  { %817 = vst.msk [vmem:[%s1539_s5 + $0x14] sm:$0xff] %vm403_vm2, %v807_v10 }
 0x696   :  { %v1174_v16 = vpop.f32.mrf.mxu0 }
 0x697   :  { %v913_v17 = vsel %vm286_vm10, %v1174_v16, -inf }
 0x698   :  { %914 = vmax.xlane.f32.xlu0 %v913_v17  ;;  %v901_v18 = vpop.f32.mrf.mxu0 }
 0x699   :  { %v910_v19 = vsel %vm282_vm11, %v901_v18, -inf }
 0x69a   :  { %911 = vmax.xlane.f32.xlu1 %v910_v19 }
 0x721   :  { %v915_v20 = vpop.xlane.xlu0 %914 }
 0x722   :  { %v917_v21 = vsub.f32 %v1174_v16, %v915_v20 }
 0x723   :  { %v912_v22 = vpop.xlane.xlu1 %911 }
 0x724   :  { %v920_v23 = vmul.f32 1.442695, %v917_v21  ;;  %v916_v24 = vsub.f32 %v901_v18, %v912_v22 }
 0x726   :  { %1213 = vpow2.f32 %v920_v23  ;;  %v918_v25 = vmul.f32 1.442695, %v916_v24 }
 0x728   :  { %1215 = vpow2.f32 %v918_v25 }
 0x733   :  { %v1214_v26 = vpop.eup %1213 }
 0x734   :  { %v925_v27 = vsel %vm286_vm10, %v1214_v26, 0.0 }
 0x735   :  { %v1216_v28 = vpop.eup %1215  ;;  %926 = vadd.xlane.f32.xlu1 %v925_v27 }
 0x736   :  { %v922_v29 = vsel %vm282_vm11, %v1216_v28, 0.0 }
 0x737   :  { %923 = vadd.xlane.f32.xlu0 %v922_v29 }
 0x746   :  { %932 = vrot.lane.b32.xlu1 %v1450_v57, %s1225_s20 }
 0x74d   :  { %934 = vrot.lane.b32.xlu0 %v1441_v55, %s1225_s20 }
 0x7be   :  { %v927_v30 = vpop.xlane.xlu1 %926 }
 0x7bf   :  { %1217 = vrcp.f32 %v927_v30 }
 0x7c0   :  { %v924_v31 = vpop.xlane.xlu0 %923 }
 0x7c1   :  { %1219 = vrcp.f32 %v924_v31 }
 0x7c2   :  { %v933_v33 = vpop.permute.xlu1 %932 }
 0x7c4   :  { %v935_v32 = vpop.permute.xlu0 %934 }
 0x7c5   :  { %1175 = vmatprep.subr.msk.mxu1 %vm323_vm14, %v935_v32 }
 0x7c6   :  { %1176 = vmatpush3.msk.msra.mxu1 %vm323_vm14, %v935_v32 }
 0x7c7   :  { %1177 = vmatprep.subr.mxu1 %v933_v33 }
 0x7c8   :  { %1178 = vmatpush3.msra.mxu1 %v933_v33 }
 0x7cc   :  { %v1218_v34 = vpop.eup %1217 }
 0x7cd   :  { %v931_v35 = vmul.f32 %v1218_v34, %v1214_v26 }
 0x7ce   :  { %v1220_v36 = vpop.eup %1219 }
 0x7cf   :  { %v930_v37 = vmul.f32 %v1220_v36, %v1216_v28  ;;  %1021 = vst.msk [vmem:[%s1538_s6 + $0x26] sm:$0x3] %vm286_vm10, %v931_v35 }
 0x7d1   :  { %1179 = vmatprep.mubr.msk.f32.mxu1 %vm282_vm11, %v930_v37  ;;  %1020 = vst.msk [vmem:[%s1538_s6 + $0x1e] sm:$0xff] %vm282_vm11, %v930_v37 }
 0x7d2   :  { %1180 = vmatmul.mubr.msk.f32.vlgmr.msra.gmra.mxu1 %vm282_vm11, %v931_v35 }
 0x892   :  { %v1181_v38 = vpop.f32.mrf.mxu1 }
 0x893   :  { %v1017_v39 = vadd.f32 %v1181_v38, %v1412_v11 }
 0x894   :  { %v1011_v40 = vpop.f32.mrf.mxu1 }
 0x895   :  { %1023 = vst.msk [vmem:[%s1539_s5 + $0x26] sm:$0x3] %vm405_vm1, %v1017_v39  ;;  %v1012_v41 = vadd.f32 %v1412_v11, %v1011_v40 }
 0x897   :  { %1022 = vst.msk [vmem:[%s1539_s5 + $0x1e] sm:$0xff] %vm403_vm2, %v1012_v41 }

</bundles_post_ra>
